<compile_context>
chip_gen: v7x
topology: tpu7x:2x2x1
jax: 0.10.0
libtpu: 0.0.40
codegen_flags: <defaults>
</compile_context>

<pallas_src>
import math
import functools

import jax
import jax.numpy as jnp
from jax.experimental import pallas as pl
from jax.experimental.pallas import tpu as pltpu

HEADER_ROWS = 8  # rows 0..3 = [freqs, cos-mask, b1, b2]; rows 4..7 = zero pad


def _k_dim(n_channels: int) -> int:
    """K (contraction dim) of the first matmul inside the kernel.

    If C//4 is lane-aligned (multiple of 128) we use the natural K = C//4
    (sliced path); otherwise we keep the zero-padded K = C path so every
    slice stays trivially aligned at small C.
    """
    quarter = n_channels // 4
    return quarter if quarter % 128 == 0 else n_channels


def _time_embedding_kernel(t_ref, p_ref, o_ref, *, n_channels: int,
                           k_dim: int, use_bf16: bool):
    """Fused: sinusoidal embedding -> lin1 -> swish -> lin2.

    t_ref : (TB, 1)                 f32  timesteps (one batch tile)
    p_ref : (8 + K + C, C)          f32  packed constants:
              row 0              : freqs [f, f] (zero-padded to C)
              row 1              : cos mask (1.0 where cos, else 0)
              row 2 / row 3      : b1 / b2
              rows 8 .. 8+K      : W1^T (K = C//4 natural, or C zero-padded)
              rows 8+K .. 8+K+C  : W2^T
    o_ref : (TB, C)                 f32  output tile
    """
    C = n_channels
    K = k_dim
    t = t_ref[...]                                      # (TB, 1)
    freqs = p_ref[0:1, :K]                              # (1, K)
    cos_mask = p_ref[1:2, :K]                           # (1, K)
    b1 = p_ref[2:3, :]                                  # (1, C)
    b2 = p_ref[3:4, :]                                  # (1, C)
    w1 = p_ref[HEADER_ROWS:HEADER_ROWS + K, :]          # (K, C)
    w2 = p_ref[HEADER_ROWS + K:HEADER_ROWS + K + C, :]  # (C, C)

    # Exact sin/cos (no phase-offset trick).  On the padded path the inactive
    # columns have freq=0 and mask=0 -> sin(0)=0, and they hit zero W1 rows.
    arg = t * freqs                                     # (TB, K)
    emb = jnp.where(cos_mask > 0.5, jnp.cos(arg), jnp.sin(arg))

    if use_bf16:
        # v5e-friendly: bf16 MXU inputs, f32 accumulation (opt-in; ~1e-2 error).
        h = jnp.dot(emb.astype(jnp.bfloat16), w1.astype(jnp.bfloat16),
                    preferred_element_type=jnp.float32) + b1
    else:
        h = jnp.dot(emb, w1, preferred_element_type=jnp.float32) + b1
    h = h * jax.nn.sigmoid(h)                           # Swish

    if use_bf16:
        out = jnp.dot(h.astype(jnp.bfloat16), w2.astype(jnp.bfloat16),
                      preferred_element_type=jnp.float32) + b2
    else:
        out = jnp.dot(h, w2, preferred_element_type=jnp.float32) + b2
    o_ref[...] = out.astype(o_ref.dtype)


def pack_time_embedding_params(w1, b1, w2, b2, *, n_channels: int):
    """Pack all module constants into a single (8 + K + C, C) f32 buffer.

    w1: (C, C//4) PyTorch-layout lin1 weight; b1: (C,)
    w2: (C, C)    PyTorch-layout lin2 weight; b2: (C,)
    """
    C = n_channels
    assert C % 8 == 0, "n_channels must be a multiple of 8"
    assert C >= 16, "n_channels must be >= 16 (half_dim - 1 > 0)"
    half = C // 8
    quarter = C // 4
    K = _k_dim(C)
    assert w1.shape == (C, quarter) and w2.shape == (C, C)

    scale = math.log(10000.0) / (half - 1)
    freqs = jnp.exp(jnp.arange(half, dtype=jnp.float32) * -scale)          # (half,)

    freqs_row = jnp.zeros((C,), jnp.float32).at[:quarter].set(
        jnp.concatenate([freqs, freqs]))
    mask_row = jnp.zeros((C,), jnp.float32).at[half:quarter].set(1.0)

    header = jnp.stack([freqs_row, mask_row,
                        b1.astype(jnp.float32), b2.astype(jnp.float32)], axis=0)
    header = jnp.concatenate(
        [header, jnp.zeros((HEADER_ROWS - 4, C), jnp.float32)], axis=0)

    w1_t = w1.astype(jnp.float32).T                                        # (C//4, C)
    if K == quarter:
        w1_slab = w1_t                                  # natural, no K padding
    else:
        w1_slab = jnp.zeros((C, C), jnp.float32).at[:quarter, :].set(w1_t)
    w2_t = w2.astype(jnp.float32).T                                        # (C, C)

    return jnp.concatenate([header, w1_slab, w2_t], axis=0)               # (8+K+C, C)


def time_embedding_pallas(t, params, *, n_channels: int, block_b: int = 1024,
                          use_bf16_matmul: bool = False,
                          single_buffer_params=None,
                          vmem_budget_bytes: int = 48 * 1024 * 1024):
    """t: (B,) timesteps; params: output of pack_time_embedding_params."""
    C = n_channels
    K = _k_dim(C)
    nrows = HEADER_ROWS + K + C
    assert params.shape == (nrows, C), f"params must be {(nrows, C)}, got {params.shape}"
    B = t.shape[0]
    t2 = t.astype(jnp.float32).reshape(B, 1)

    params_bytes = nrows * C * 4
    if single_buffer_params is None:
        # Only worth it for large slabs (the v7x 64 MiB VMEM concern).
        single_buffer_params = params_bytes > (4 << 20)
    n_pbuf = 1 if single_buffer_params else 2

    # Per-batch-row VMEM bytes: double-buffered out (2*C) and t (2*1) tiles,
    # plus the f32 intermediates emb (K), h (C), out (C) that stay live.
    bytes_per_row = 4 * (2 * C + 2 + (K + 2 * C))
    avail = max(vmem_budget_bytes - n_pbuf * params_bytes, 0)
    max_tb = max(8, (avail // bytes_per_row) // 8 * 8)

    # Keep the batch tile sublane-aligned (multiple of 8) when tiling.
    block_b = max(8, ((int(block_b) + 7) // 8) * 8)
    tb_cap = min(block_b, int(max_tb))

    if B <= tb_cap:
        TB, Bp = B, B          # single grid step; whole-array blocks need no (8,128) split
    else:
        TB = tb_cap
        Bp = pl.cdiv(B, TB) * TB
        if Bp != B:
            t2 = jnp.pad(t2, ((0, Bp - B), (0, 0)))

    if single_buffer_params:
        # Constant index_map: fetched once, no need to double-buffer.
        params_spec = pl.BlockSpec((nrows, C), lambda i: (0, 0),
                                   pipeline_mode=pl.Buffered(1))
    else:
        params_spec = pl.BlockSpec((nrows, C), lambda i: (0, 0))

    est_vmem = n_pbuf * params_bytes + TB * bytes_per_row + (1 << 20)
    vmem_limit = int(min(128 << 20, max(32 << 20, est_vmem)))

    kernel = functools.partial(_time_embedding_kernel, n_channels=C, k_dim=K,
                               use_bf16=use_bf16_matmul)

    out = pl.pallas_call(
        kernel,
        out_shape=jax.ShapeDtypeStruct((Bp, C), jnp.float32),
        grid_spec=pltpu.PrefetchScalarGridSpec(
            num_scalar_prefetch=0,
            grid=(Bp // TB,),
            in_specs=[
                pl.BlockSpec((TB, 1), lambda i: (i, 0)),   # t tile
                params_spec,                               # params, VMEM-resident
            ],
            out_specs=pl.BlockSpec((TB, C), lambda i: (i, 0)),
        ),
        compiler_params=pltpu.CompilerParams(
            dimension_semantics=("parallel",),  # only a real lever on v7x's 2 TCs
            vmem_limit_bytes=vmem_limit),
    )(t2, params)
    return out[:B]


def time_embedding_ref(t, w1, b1, w2, b2, *, n_channels: int):
    """Pure-JAX reference mirroring the PyTorch forward exactly."""
    half = n_channels // 8
    scale = math.log(10000.0) / (half - 1)
    freqs = jnp.exp(jnp.arange(half, dtype=jnp.float32) * -scale)
    emb = t.astype(jnp.float32)[:, None] * freqs[None, :]
    emb = jnp.concatenate([jnp.sin(emb), jnp.cos(emb)], axis=1)
    hp = jax.lax.Precision.HIGHEST
    h = jnp.dot(emb, w1.T, precision=hp) + b1
    h = h * jax.nn.sigmoid(h)
    return jnp.dot(h, w2.T, precision=hp) + b2


if __name__ == "__main__":
    key = jax.random.PRNGKey(0)

    # (n_channels, batch, block_b):
    #   cfg A: C=128  -> padded K path, lane-dense (8,128) output, single grid step.
    #   cfg B: C=512  -> sliced K=C//4=128 path, multi-step grid with padded tail.
    configs = [(128, 8, 512), (512, 20, 8)]

    for idx, (C, B, blk) in enumerate(configs):
        kk = jax.random.fold_in(key, idx)
        k_t, k_w1, k_b1, k_w2, k_b2 = jax.random.split(kk, 5)
        in1 = C // 4

        # Timesteps (diffusion step indices), as floats.
        t = jax.random.randint(k_t, (B,), 0, 1000).astype(jnp.float32)

        # PyTorch-Linear-style params: weight (out_features, in_features).
        bound1 = 1.0 / math.sqrt(in1)
        bound2 = 1.0 / math.sqrt(C)
        w1 = jax.random.uniform(k_w1, (C, in1), jnp.float32, -bound1, bound1)
        b1 = jax.random.uniform(k_b1, (C,), jnp.float32, -bound1, bound1)
        w2 = jax.random.uniform(k_w2, (C, C), jnp.float32, -bound2, bound2)
        b2 = jax.random.uniform(k_b2, (C,), jnp.float32, -bound2, bound2)

        params = pack_time_embedding_params(w1, b1, w2, b2, n_channels=C)
        out = time_embedding_pallas(t, params, n_channels=C, block_b=blk)
        out = jax.block_until_ready(out)

        ref = time_embedding_ref(t, w1, b1, w2, b2, n_channels=C)
        assert out.shape == (B, C)
        # cos is computed exactly now; residual diff is only MXU-vs-XLA matmul
        # rounding and sin/cos range-reduction at t ~ 1e3 (both sub-1e-2).
        max_diff = float(jnp.max(jnp.abs(out - ref)))
        assert jnp.allclose(out, ref, atol=5e-3, rtol=5e-3), (
            f"config C={C}: mismatch, max diff {max_diff}")

    print("KERNEL_OK")
</pallas_src>

<mosaic_0001>
module attributes {stable_mosaic.version = 11 : i64} {
  func.func @_time_embedding_kernel(%arg0: i32, %arg1: memref<8x1xf32, #tpu.memory_space<vmem>>, %arg2: memref<264x128xf32, #tpu.memory_space<vmem>>, %arg3: memref<8x128xf32, #tpu.memory_space<vmem>>) attributes {dimension_semantics = [#tpu.dimension_semantics<parallel>], iteration_bounds = array<i64: 1>, scalar_prefetch = 0 : i64, scratch_operands = 0 : i64, tpu.core_type = #tpu.core_type<tc>, window_params = [{transform_indices = @transform_0, window_bounds = array<i64: 8, 1>}, {pipeline_mode = #tpu.pipeline_mode<synchronous>, transform_indices = @transform_1, window_bounds = array<i64: 264, 128>}, {transform_indices = @transform_2, window_bounds = array<i64: 8, 128>}]} {
    %c0 = arith.constant 0 : index
    %c0_0 = arith.constant 0 : index
    %0 = vector.load %arg1[%c0, %c0_0] : memref<8x1xf32, #tpu.memory_space<vmem>>, vector<8x1xf32>
    %c0_1 = arith.constant 0 : index
    %c0_2 = arith.constant 0 : index
    %1 = vector.load %arg2[%c0_1, %c0_2] : memref<264x128xf32, #tpu.memory_space<vmem>>, vector<1x128xf32>
    %c1 = arith.constant 1 : index
    %c0_3 = arith.constant 0 : index
    %2 = vector.load %arg2[%c1, %c0_3] : memref<264x128xf32, #tpu.memory_space<vmem>>, vector<1x128xf32>
    %c2 = arith.constant 2 : index
    %c0_4 = arith.constant 0 : index
    %3 = vector.load %arg2[%c2, %c0_4] : memref<264x128xf32, #tpu.memory_space<vmem>>, vector<1x128xf32>
    %c3 = arith.constant 3 : index
    %c0_5 = arith.constant 0 : index
    %4 = vector.load %arg2[%c3, %c0_5] : memref<264x128xf32, #tpu.memory_space<vmem>>, vector<1x128xf32>
    %c8 = arith.constant 8 : index
    %c0_6 = arith.constant 0 : index
    %5 = vector.load %arg2[%c8, %c0_6] : memref<264x128xf32, #tpu.memory_space<vmem>>, vector<128x128xf32>
    %c136 = arith.constant 136 : index
    %c0_7 = arith.constant 0 : index
    %6 = vector.load %arg2[%c136, %c0_7] : memref<264x128xf32, #tpu.memory_space<vmem>>, vector<128x128xf32>
    %7 = vector.broadcast %0 : vector<8x1xf32> to vector<8x128xf32>
    %8 = vector.broadcast %1 : vector<1x128xf32> to vector<8x128xf32>
    %9 = arith.mulf %7, %8 : vector<8x128xf32>
    %cst = arith.constant 5.000000e-01 : f32
    %10 = vector.broadcast %cst : f32 to vector<1x128xf32>
    %11 = arith.cmpf ogt, %2, %10 : vector<1x128xf32>
    %12 = math.cos %9 : vector<8x128xf32>
    %13 = math.sin %9 : vector<8x128xf32>
    %14 = vector.shape_cast %11 : vector<1x128xi1> to vector<1x128xi1>
    %15 = vector.broadcast %14 : vector<1x128xi1> to vector<8x128xi1>
    %16 = arith.select %15, %12, %13 : vector<8x128xi1>, vector<8x128xf32>
    %cst_8 = arith.constant dense<0.000000e+00> : vector<8x128xf32>
    %17 = tpu.matmul %16, %5, %cst_8 {dimension_numbers = #tpu.dot_dimension_numbers<[1], [0], [0], [1], [0, 0, 1, 1], [], []>} : vector<8x128xf32>, vector<128x128xf32>, vector<8x128xf32> -> vector<8x128xf32>
    %18 = vector.broadcast %3 : vector<1x128xf32> to vector<8x128xf32>
    %19 = arith.addf %17, %18 : vector<8x128xf32>
    %20 = arith.negf %19 : vector<8x128xf32>
    %21 = math.exp %20 : vector<8x128xf32>
    %cst_9 = arith.constant 1.000000e+00 : f32
    %22 = vector.broadcast %cst_9 : f32 to vector<8x128xf32>
    %23 = arith.addf %22, %21 : vector<8x128xf32>
    %24 = arith.divf %22, %23 : vector<8x128xf32>
    %25 = arith.mulf %19, %24 : vector<8x128xf32>
    %cst_10 = arith.constant dense<0.000000e+00> : vector<8x128xf32>
    %26 = tpu.matmul %25, %6, %cst_10 {dimension_numbers = #tpu.dot_dimension_numbers<[1], [0], [0], [1], [0, 0, 1, 1], [], []>} : vector<8x128xf32>, vector<128x128xf32>, vector<8x128xf32> -> vector<8x128xf32>
    %27 = vector.broadcast %4 : vector<1x128xf32> to vector<8x128xf32>
    %28 = arith.addf %26, %27 : vector<8x128xf32>
    %c0_11 = arith.constant 0 : index
    %c0_12 = arith.constant 0 : index
    %29 = vector.load %arg3[%c0_11, %c0_12] : memref<8x128xf32, #tpu.memory_space<vmem>>, vector<8x128xf32>
    tpu.vector_store %arg3[%c0_11, %c0_12], %28 {strides = array<i32>} : memref<8x128xf32, #tpu.memory_space<vmem>>, vector<8x128xf32>,
    return
  }
  func.func @transform_0(%arg0: i32) -> (i32, i32) {
    %c0_i32 = arith.constant 0 : i32
    %c0_i32_0 = arith.constant 0 : i32
    return %arg0, %c0_i32 : i32, i32
  }
  func.func @transform_1(%arg0: i32) -> (i32, i32) {
    %c0_i32 = arith.constant 0 : i32
    %c0_i32_0 = arith.constant 0 : i32
    %c0_i32_1 = arith.constant 0 : i32
    return %c0_i32, %c0_i32_0 : i32, i32
  }
  func.func @transform_2(%arg0: i32) -> (i32, i32) {
    %c0_i32 = arith.constant 0 : i32
    %c0_i32_0 = arith.constant 0 : i32
    return %arg0, %c0_i32 : i32, i32
  }
}

</mosaic_0001>

<bundles_post_ra>
// kernel: tpu_custom_call.1
= control target key start
LH: loop header
LB: loop body
LE: loop exit
PB: predicated region body
PF: predicated region fallthrough
CT: control target
= control target key end

     0   :  { %7 = vsyncpa [#allocation3], 0  ;;  %s794_s0 = inlined_call_operand.vmem [shape: f32[8,1], index: 0, kind: input, shape index: {}]   ;;  %s795_s1 = inlined_call_operand.hbm [shape: f32[264,128], index: 1, kind: input, shape index: {}]   ;;  %s796_s2 = inlined_call_operand.hbm [shape: f32[8,128], index: 2, kind: output, shape index: {}]  }
   0x1   :  { %8 = vsyncpa [#allocation4], 0  ;;  %s698_s9 = smov [#allocation2]   ;;  %s650_s13 = scalar_lea.hbm %s795_s1, 4224 }
   0x2   :  { %s16_s10 = sshll.u32 %s698_s9, 4  ;;  %p651_p0 = scmp.ne.s32.totalorder %s795_s1, %s650_s13  ;;  %s17_s10 = int_to_ptr.vmem [resolvable:$true] %s16_s10 }
   0x3   :  { %p654_p1 = scmp.lt.u32.totalorder %s650_s13, %s795_s1 }
   0x5   :  { %p656_p2 = pnand %p654_p1, %p651_p0 }
   0x7   :  { %659 = shalt.err (!%p656_p2)
}
   0x8   :  { %s660_s18 = scalar_lea.vmem %s17_s10, 4224  ;;  %p665_p4 = scmp.lt.s32.totalorder %s17_s10, %s17_s10 }
   0x9   :  { %p661_p3 = scmp.ne.s32.totalorder %s17_s10, %s660_s18  ;;  %p666_p5 = scmp.lt.s32.totalorder %s660_s18, %s660_s18 }
   0xb   :  { %p667_p6 = por %p666_p5, %p665_p4 }
   0xd   :  { %p668_p7 = pnand %p667_p6, %p661_p3 }
   0xf   :  { %671 = shalt.err (!%p668_p7)
}
  0x10   :  { %s699_s19 = smov 128   ;;  %s700_s20 = smov 8  }
  0x11   :  { %22 = dma.hbm_to_vmem [thread:$0]  %s795_s1, 4224, %s17_s10, [#allocation3], %s699_s19, %s699_s19, %s700_s20  }
  0x12   :  { %694 = dma.done.wait [#allocation3], 4224  }
  0x13   :  { %695 = vsyncadd [#allocation3], 4294963072  ;;  %v701_v0 = vmov 0   ;;  %v26_v1 = vld [vmem:[%s794_s0] sm:$0xff]  ;;  %v31_v2 = vld [vmem:[#allocation2 + $0x8] sm:$0xff]  ;;  %v702_v5 = vmov 0.0|0.0  }
  0x14   :  { %641 = vset.pattern.permute.xlu0 %v701_v0  ;;  %v32_v3 = vld [vmem:[#allocation2 + $0x10] sm:$0xff]  ;;  %575 = vmatprep.subr.bf16.mxu0 %v702_v5  ;;  %v33_v6 = vld [vmem:[#allocation2 + $0x18] sm:$0xff]  ;;  %v34_v7 = vld [vmem:[#allocation2 + $0x20] sm:$0xff]  ;;  %vm703_vm0 = vmmov 0   ;;  %v704_v20 = vmov 0.0   ;;  %s711_s0 = smov [#allocation5]  }
  0x15   :  { %65 = vperm.xlu0 %641, %v26_v1   ;;  %v576_v4 = vpack.c.bf16 %v32_v3, %v31_v2  ;;  %599 = vmatprep.subr.bf16.mxu1 %v702_v5  ;;  %v579_v8 = vpack.c.bf16 %v34_v7, %v33_v6  ;;  %v35_v9 = vld [vmem:[#allocation2 + $0x28] sm:$0xff]  ;;  %v36_v10 = vld [vmem:[#allocation2 + $0x30] sm:$0xff]  ;;  %v37_v12 = vld [vmem:[#allocation2 + $0x38] sm:$0xff]  ;;  %v705_v41 = vmov 683565275   ;;  %s450_s1 = sshll.u32 %s711_s0, 4  ;;  %s451_s1 = int_to_ptr.vmem [resolvable:$true] %s450_s1 }
  0x16   :  { %v582_v11 = vpack.c.bf16 %v36_v10, %v35_v9  ;;  %v38_v13 = vld [vmem:[#allocation2 + $0x40] sm:$0xff]  ;;  %v39_v15 = vld [vmem:[#allocation2 + $0x48] sm:$0xff]  ;;  %v40_v16 = vld [vmem:[#allocation2 + $0x50] sm:$0xff]  ;;  %537 = vmatprep.mubr.msk.f32.mxu0 %vm703_vm0, %v704_v20  ;;  %572 = vmatprep.mubr.msk.f32.mxu1 %vm703_vm0, %v704_v20  ;;  %v706_v43 = vmov 2475754826   ;;  %s672_s25 = scalar_lea.vmem %s451_s1, 128  ;;  %p677_p9 = scmp.lt.s32.totalorder %s451_s1, %s451_s1 }
  0x17   :  { %577 = vmatpush3.bf16.msra.mxu0 %v576_v4  ;;  %v585_v14 = vpack.c.bf16 %v38_v13, %v37_v12  ;;  %v41_v17 = vld [vmem:[#allocation2 + $0x58] sm:$0xff]  ;;  %v588_v18 = vpack.c.bf16 %v40_v16, %v39_v15  ;;  %v42_v19 = vld [vmem:[#allocation2 + $0x60] sm:$0xff]  ;;  %v43_v22 = vld [vmem:[#allocation2 + $0x68] sm:$0xff]  ;;  %v707_v46 = vmov 2131351028   ;;  %p673_p8 = scmp.ne.s32.totalorder %s451_s1, %s672_s25  ;;  %p678_p10 = scmp.lt.s32.totalorder %s672_s25, %s672_s25 }
  0x18   :  { %578 = vmatprep.subr.bf16.mxu0 %v702_v5  ;;  %v591_v21 = vpack.c.bf16 %v42_v19, %v41_v17  ;;  %v44_v23 = vld [vmem:[#allocation2 + $0x70] sm:$0xff]  ;;  %v45_v25 = vld [vmem:[#allocation2 + $0x78] sm:$0xff]  ;;  %v46_v26 = vld [vmem:[#allocation2 + $0x80] sm:$0xff]  ;;  %v708_v49 = vmov 2102212464  }
  0x19   :  { %v594_v24 = vpack.c.bf16 %v44_v23, %v43_v22  ;;  %v597_v27 = vpack.c.bf16 %v46_v26, %v45_v25  ;;  %v459_v28 = vld [vmem:[#allocation2] ss:$0 sm:$0xff]  ;;  %v709_v52 = vmov 920167782   ;;  %v710_v55 = vmov 1326507024   ;;  %p679_p11 = por %p678_p10, %p677_p9 }
  0x1b   :  { %580 = vmatpush3.bf16.msra.mxu0 %v579_v8  ;;  %p680_p12 = pnand %p679_p11, %p673_p8 }
  0x1c   :  { %581 = vmatprep.subr.bf16.mxu0 %v702_v5 }
  0x1f   :  { %583 = vmatpush3.bf16.msra.mxu0 %v582_v11 }
  0x20   :  { %584 = vmatprep.subr.bf16.mxu0 %v702_v5 }
  0x23   :  { %586 = vmatpush3.bf16.msra.mxu0 %v585_v14 }
  0x24   :  { %587 = vmatprep.subr.bf16.mxu0 %v702_v5 }
  0x27   :  { %589 = vmatpush3.bf16.msra.mxu0 %v588_v18 }
  0x28   :  { %590 = vmatprep.subr.bf16.mxu0 %v702_v5 }
  0x2b   :  { %592 = vmatpush3.bf16.msra.mxu0 %v591_v21 }
  0x2c   :  { %593 = vmatprep.subr.bf16.mxu0 %v702_v5 }
  0x2f   :  { %595 = vmatpush3.bf16.msra.mxu0 %v594_v24 }
  0x30   :  { %596 = vmatprep.subr.bf16.mxu0 %v702_v5 }
  0x33   :  { %598 = vmatpush3.bf16.msra.mxu0 %v597_v27 }
  0x94   :  { %v66_v29 = vpop.permute.xlu0 %65 }
  0x95   :  { %v752_v30 = vmul.f32 %v459_v28, %v66_v29 }
  0x97   :  { %v77_v31 = vand.u32 2139095040, %v752_v30  ;;  %v74_v35 = vand.u32 2147483647, %v752_v30  ;;  %vm76_vm8 = vcmp.lt.s32.totalorder %v752_v30, 0 }
  0x99   :  { %v78_v32 = vshrl.u32 %v77_v31, 23  ;;  %v81_v38 = vand.u32 8388607, %v74_v35  ;;  %vm75_vm9 = vcmp.le.f32.partialorder %v74_v35, 0.7853982 }
  0x9b   :  { %v460_v33 = vadd.s32 4294967169, %v78_v32  ;;  %v82_v57 = vor.u32 8388608, %v81_v38 }
  0x9d   :  { %v84_v34 = vadd.s32 1, %v460_v33  ;;  %v122_v9 = vshll.u32 %v82_v57, 8 }
  0x9f   :  { %vm85_vm1 = vcmp.gt.s32.totalorder %v84_v34, 0 }
  0xa0   :  { %v86_v36 = vsel %vm85_vm1, %v84_v34, 0 }
  0xa1   :  { %v88_v37 = vand.u32 31, %v86_v36  ;;  %v87_v40 = vshrl.u32 %v86_v36, 5 }
  0xa3   :  { %v89_v39 = vsub.s32 32, %v88_v37  ;;  %v91_v42 = vshll.u32 %v705_v41, %v88_v37  ;;  %v94_v44 = vshll.u32 %v706_v43, %v88_v37  ;;  %v97_v48 = vshll.u32 %v707_v46, %v88_v37 }
  0xa4   :  { %v100_v51 = vshll.u32 %v708_v49, %v88_v37  ;;  %v103_v54 = vshll.u32 %v709_v52, %v88_v37  ;;  %vm106_vm2 = vcmp.lt.s32.totalorder %v87_v40, 1  ;;  %vm109_vm3 = vcmp.lt.s32.totalorder %v87_v40, 4 }
  0xa5   :  { %v92_v45 = vshrl.u32 %v706_v43, %v89_v39  ;;  %v95_v47 = vshrl.u32 %v707_v46, %v89_v39  ;;  %v98_v50 = vshrl.u32 %v708_v49, %v89_v39  ;;  %v101_v53 = vshrl.u32 %v709_v52, %v89_v39 }
  0xa6   :  { %v104_v56 = vshrl.u32 %v710_v55, %v89_v39  ;;  %v90_v3 = vshrl.u32 %v705_v41, %v89_v39  ;;  %vm108_vm4 = vcmp.lt.s32.totalorder %v87_v40, 3  ;;  %vm107_vm5 = vcmp.lt.s32.totalorder %v87_v40, 2 }
  0xa7   :  { %v93_v58 = vor.u32 %v92_v45, %v91_v42  ;;  %v96_v59 = vor.u32 %v95_v47, %v94_v44  ;;  %v99_v60 = vor.u32 %v98_v50, %v97_v48  ;;  %v102_v61 = vor.u32 %v101_v53, %v100_v51  ;;  %v28_v51 = vld [vmem:[#allocation2 + $0x1] sm:$0x1] }
  0xa8   :  { %v105_v62 = vor.u32 %v104_v56, %v103_v54  ;;  %v282_v47 = vlaneseq  ;;  %vm73_vm10 = vcmp.gt.f32.partialorder %v28_v51, 0.5 }
  0xa9   :  { %v111_v63 = vsel %vm109_vm3, %v99_v60, 2102212464  ;;  %v114_v1 = vsel %vm106_vm2, %v93_v58, %v96_v59  ;;  %v118_v2 = vsel %vm106_vm2, %v96_v59, %v99_v60  ;;  %v115_v4 = vsel %vm109_vm3, %v102_v61, 920167782 }
  0xaa   :  { %v119_v6 = vsel %vm109_vm3, %v105_v62, 1326507024  ;;  %v116_v7 = vsel %vm108_vm4, %v99_v60, %v115_v4  ;;  %v110_v10 = vsel %vm106_vm2, %v90_v3, %v93_v58  ;;  %v112_v11 = vsel %vm108_vm4, %v96_v59, %v111_v63 }
  0xab   :  { %v120_v8 = vsel %vm108_vm4, %v102_v61, %v119_v6  ;;  %v117_v12 = vsel %vm107_vm5, %v114_v1, %v116_v7  ;;  %v113_v18 = vsel %vm107_vm5, %v110_v10, %v112_v11  ;;  %v283_v53 = vshrl.u32 %v282_v47, 7  ;;  %v47_v10 = vld [vmem:[#allocation2 + $0x88] sm:$0xff]  ;;  %v48_v11 = vld [vmem:[#allocation2 + $0x90] sm:$0xff] }
  0xac   :  { %v121_v13 = vsel %vm107_vm5, %v118_v2, %v120_v8  ;;  %v761_v16 = vmul.u32.u64.low %v122_v9, %v117_v12  ;;  %v762_v17 = vmul.u32.u64.high %v122_v9, %v117_v12, %v761_v16  ;;  %v129_v20 = vmul.u32 %v122_v9, %v113_v18  ;;  %v53_v18 = vld [vmem:[#allocation2 + $0xb8] sm:$0xff] }
  0xad   :  { %v758_v14 = vmul.u32.u64.low %v122_v9, %v121_v13  ;;  %v759_v15 = vmul.u32.u64.high %v122_v9, %v121_v13, %v758_v14  ;;  %v284_v55 = vsub.s32 0, %v283_v53  ;;  %v281_v57 = vsel %vm73_vm10, 1, %v701_v0  ;;  %v49_v13 = vld [vmem:[#allocation2 + $0x98] sm:$0xff] }
  0xae   :  { %v132_v19 = vadd.s32 1, %v762_v17  ;;  %vm166_vm2 = vweird.f32 %v752_v30  ;;  %v600_v12 = vpack.c.bf16 %v48_v11, %v47_v10  ;;  %v50_v14 = vld [vmem:[#allocation2 + $0xa0] sm:$0xff] }
  0xaf   :  { %vm131_vm6 = vc.u32 %v759_v15, %v761_v16  ;;  %v130_v33 = vadd.s32 %v761_v16, %v759_v15  ;;  %v285_v58 = vrot.slane %v281_v57, %v284_v55  ;;  %v603_v15 = vpack.c.bf16 %v50_v14, %v49_v13  ;;  %v52_v16 = vld [vmem:[#allocation2 + $0xb0] sm:$0xff] }
  0xb0   :  { %v133_v21 = vsel %vm131_vm6, %v132_v19, %v762_v17  ;;  %601 = vmatpush3.bf16.msra.mxu1 %v600_v12  ;;  %v54_v19 = vld [vmem:[#allocation2 + $0xc0] sm:$0xff] }
  0xb1   :  { %v134_v22 = vadd.s32 %v133_v21, %v129_v20  ;;  %vm286_vm11 = vcmp.eq.s32.totalorder %v285_v58, 1  ;;  %602 = vmatprep.subr.bf16.mxu1 %v702_v5  ;;  %v609_v20 = vpack.c.bf16 %v54_v19, %v53_v18  ;;  %v55_v21 = vld [vmem:[#allocation2 + $0xc8] sm:$0xff] }
  0xb3   :  { %v135_v23 = vadd.s32 536870912, %v134_v22 }
  0xb4   :  { %604 = vmatpush3.bf16.msra.mxu1 %v603_v15 }
  0xb5   :  { %v136_v24 = vshrl.u32 %v135_v23, 30  ;;  %605 = vmatprep.subr.bf16.mxu1 %v702_v5 }
  0xb7   :  { %v137_v25 = vshll.u32 %v136_v24, 30  ;;  %v160_v46 = vsub.s32 4, %v136_v24 }
  0xb9   :  { %v138_v26 = vsub.s32 %v134_v22, %v137_v25  ;;  %v161_v50 = vsel %vm76_vm8, %v160_v46, %v136_v24  ;;  %v56_v22 = vld [vmem:[#allocation2 + $0xd0] sm:$0xff]  ;;  %v57_v24 = vld [vmem:[#allocation2 + $0xd8] sm:$0xff]  ;;  %v58_v25 = vld [vmem:[#allocation2 + $0xe0] sm:$0xff] }
  0xba   :  { %v163_v54 = vsel %vm75_vm9, 0, %v161_v50  ;;  %v612_v23 = vpack.c.bf16 %v56_v22, %v55_v21 }
  0xbb   :  { %v140_v27 = vsub.s32 0, %v138_v26  ;;  %v270_v56 = vadd.s32 3, %v163_v54  ;;  %v167_v59 = vand.u32 3, %v163_v54 }
  0xbd   :  { %v461_v28 = vmin.u32 %v140_v27, %v138_v26  ;;  %v271_v60 = vand.u32 3, %v270_v56  ;;  %vm172_vm12 = vcmp.eq.s32.totalorder %v167_v59, 2  ;;  %vm169_vm14 = vcmp.eq.s32.totalorder %v167_v59, 0  ;;  %v59_v27 = vld [vmem:[#allocation2 + $0xe8] sm:$0xff] }
  0xbe   :  { %vm168_vm0 = vcmp.lt.s32.totalorder %v167_v59, 2 }
  0xbf   :  { %v142_v29 = vclz %v461_v28  ;;  %vm276_vm13 = vcmp.eq.s32.totalorder %v271_v60, 2  ;;  %vm273_vm15 = vcmp.eq.s32.totalorder %v271_v60, 0  ;;  %vm272_vm1 = vcmp.lt.s32.totalorder %v271_v60, 2  ;;  %v60_v28 = vld [vmem:[#allocation2 + $0xf0] sm:$0xff] }
  0xc1   :  { %v462_v31 = vadd.s32 4294967294, %v142_v29  ;;  %v618_v29 = vpack.c.bf16 %v60_v28, %v59_v27 }
  0xc3   :  { %vm463_vm7 = vcmp.lt.s32.totalorder %v462_v31, 0 }
  0xc4   :  { %v145_v32 = vsel %vm463_vm7, 0, %v462_v31  ;;  %v61_v31 = vld [vmem:[#allocation2 + $0xf8] sm:$0xff] }
  0xc5   :  { %v146_v34 = vsub.s32 32, %v145_v32  ;;  %v150_v36 = vsub.s32 4294967266, %v145_v32  ;;  %v147_v37 = vshll.u32 %v138_v26, %v145_v32  ;;  %v615_v26 = vpack.c.bf16 %v58_v25, %v57_v24  ;;  %v62_v32 = vld [vmem:[#allocation2 + $0x100] sm:$0xff] }
  0xc7   :  { %v148_v38 = vshrl.u32 %v130_v33, %v146_v34  ;;  %v151_v39 = vadd.s32 127, %v150_v36  ;;  %v621_v33 = vpack.c.bf16 %v62_v32, %v61_v31  ;;  %v468_v34 = vld [vmem:[#allocation2 + $0x2] ss:$0 sm:$0xff] }
  0xc9   :  { %v149_v40 = vor.u32 %v148_v38, %v147_v37  ;;  %v152_v41 = vshll.u32 %v151_v39, 23 }
  0xcb   :  { %v153_v42 = vor.u32 4788187, %v152_v41  ;;  %v156_v44 = vcvt.s32.f32 %v149_v40 }
  0xcd   :  { %v154_v43 = vand.u32 2147483647, %v153_v42 }
  0xcf   :  { %v157_v45 = vmul.f32 %v156_v44, %v154_v43  ;;  %v470_v44 = vld [vmem:[#allocation2 + $0x3] ss:$0 sm:$0xff] }
  0xd1   :  { %v158_v48 = vxor.u32 2147483648, %v157_v45 }
  0xd3   :  { %v159_v49 = vsel %vm76_vm8, %v158_v48, %v157_v45 }
  0xd4   :  { %v162_v52 = vsel %vm75_vm9, %v752_v30, %v159_v49  ;;  %v51_v30 = vld [vmem:[#allocation2 + $0xa8] sm:$0xff] }
  0xd5   :  { %642 = vcosq.f32 %v162_v52  ;;  %v606_v17 = vpack.c.bf16 %v52_v16, %v51_v30 }
  0xd6   :  { %644 = vsinq.f32 %v162_v52 }
  0xd7   :  { %607 = vmatpush3.bf16.msra.mxu1 %v606_v17 }
  0xd8   :  { %608 = vmatprep.subr.bf16.mxu1 %v702_v5 }
  0xdb   :  { %610 = vmatpush3.bf16.msra.mxu1 %v609_v20 }
  0xdc   :  { %611 = vmatprep.subr.bf16.mxu1 %v702_v5 }
  0xdf   :  { %v643_v61 = vpop.eup %642  ;;  %613 = vmatpush3.bf16.msra.mxu1 %v612_v23 }
  0xe0   :  { %v645_v62 = vpop.eup %644  ;;  %v173_v35 = vxor.u32 2147483648, %v643_v61  ;;  %614 = vmatprep.subr.bf16.mxu1 %v702_v5 }
  0xe1   :  { %v170_v63 = vxor.u32 2147483648, %v645_v62 }
  0xe2   :  { %v174_v1 = vsel %vm172_vm12, %v173_v35, %v645_v62  ;;  %v278_v2 = vsel %vm276_vm13, %v173_v35, %v645_v62 }
  0xe3   :  { %v171_v3 = vsel %vm169_vm14, %v643_v61, %v170_v63  ;;  %v275_v4 = vsel %vm273_vm15, %v643_v61, %v170_v63  ;;  %616 = vmatpush3.bf16.msra.mxu1 %v615_v26 }
  0xe4   :  { %v175_v0 = vsel %vm168_vm0, %v171_v3, %v174_v1  ;;  %v279_v6 = vsel %vm272_vm1, %v275_v4, %v278_v2  ;;  %617 = vmatprep.subr.bf16.mxu1 %v702_v5 }
  0xe5   :  { %v176_v7 = vsel %vm166_vm2, nan, %v175_v0  ;;  %v280_v8 = vsel %vm166_vm2, nan, %v279_v6 }
  0xe6   :  { %v287_v9 = vsel %vm286_vm11, %v176_v7, %v280_v8 }
  0xe7   :  { %538 = vmatmul.mubr.f32.vlgmr.msra.gmra.mrb[0].mxu0 %v287_v9  ;;  %619 = vmatpush3.bf16.msra.mxu1 %v618_v29 }
  0xe8   :  { %620 = vmatprep.subr.bf16.mxu1 %v702_v5 }
  0xeb   :  { %622 = vmatpush3.bf16.msra.mxu1 %v621_v33 }
 0x1ba   :  { %v358_v36 = vpop.f32.mrb[0].mxu0 }
 0x1bb   :  { %v359_v37 = vadd.f32 %v468_v34, %v358_v36  ;;  %v539_v38 = vpop.f32.mrb[1].mxu0 }
 0x1bd   :  { %v469_v39 = vmul.f32 -1.442695, %v359_v37 }
 0x1bf   :  { %646 = vpow2.f32 %v469_v39 }
 0x1c9   :  { %v647_v40 = vpop.eup %646 }
 0x1ca   :  { %v365_v41 = vadd.f32 1.0, %v647_v40 }
 0x1cc   :  { %648 = vrcp.f32 %v365_v41 }
 0x1d6   :  { %v649_v42 = vpop.eup %648 }
 0x1d7   :  { %v368_v43 = vmul.f32 %v649_v42, %v359_v37 }
 0x1d9   :  { %573 = vmatmul.mubr.f32.vlgmr.msra.gmra.mrb[0].mxu1 %v368_v43 }
 0x2ac   :  { %v439_v5 = vpop.f32.mrb[0].mxu1 }
 0x2ad   :  { %v440_v45 = vadd.f32 %v470_v44, %v439_v5  ;;  %v574_v46 = vpop.f32.mrb[1].mxu1 }
 0x2af   :  { %443 = vst [vmem:[#allocation5] sm:$0xff] %v440_v45 }
 0x2b0   :  { %683 = shalt.err (!%p680_p12)
}
 0x2b1   :  { %s684_s28 = scalar_lea.hbm %s796_s2, 128 }
 0x2b2   :  { %p685_p13 = scmp.ne.s32.totalorder %s796_s2, %s684_s28  ;;  %p688_p0 = scmp.lt.u32.totalorder %s684_s28, %s796_s2 }
 0x2b4   :  { %p690_p1 = pnand %p688_p0, %p685_p13 }
 0x2b6   :  { %693 = shalt.err (!%p690_p1)
}
 0x2b7   :  { %453 = dma.vmem_to_hbm [thread:$0]  %s451_s1, 128, %s796_s2, [#allocation4]  }
 0x2b8   :  { %696 = dma.done.wait [#allocation4], 128  }
 0x2b9   :  { %697 = vsyncadd [#allocation4], 4294967168 }
 0x2ba   :  { %457 = vsyncpa [#allocation3], 1 }
 0x2bb   :  { %458 = vsyncpa [#allocation4], 1 }

</bundles_post_ra>
